<compile_context>
chip_gen: v5e
topology: v5e:2x2
jax: 0.10.0
libtpu: 0.0.40
codegen_flags: <defaults>
</compile_context>

<pallas_src>
import functools
import math

import jax
import jax.numpy as jnp
from jax import lax
from jax.experimental import pallas as pl
from jax.experimental.pallas import tpu as pltpu


def _round_up(x, m):
    return (x + m - 1) // m * m


def _fused_conv_bn_relu_kernel(x_ref, w_ref, g_ref, b_ref, o_ref,
                               conv_sl, sum_sl, sq_sl, sc_sl, sh_sl,
                               *, n_valid, eps):
    """grid = (phase, tile).  phase 0: conv + stats; phase 1: BN + ReLU."""
    p = pl.program_id(0)
    i = pl.program_id(1)
    nt = pl.num_programs(1)
    tile_p = o_ref.shape[1]
    off = pl.multiple_of(i * tile_p, 128)

    @pl.when(p == 0)
    def _conv_and_stats():
        @pl.when(i == 0)
        def _():
            sum_sl[...] = jnp.zeros_like(sum_sl)
            sq_sl[...] = jnp.zeros_like(sq_sl)

        # (Cout, K) bf16 x (K, tile_p) bf16 -> (Cout, tile_p) f32 accumulation.
        acc = jnp.dot(w_ref[...], x_ref[...],
                      preferred_element_type=jnp.float32)
        conv_sl[:, pl.ds(off, tile_p)] = acc
        sum_sl[...] += jnp.sum(acc, axis=1, keepdims=True)
        sq_sl[...] += jnp.sum(acc * acc, axis=1, keepdims=True)

        # Finalize per-channel scale/shift once (training-mode batch stats).
        @pl.when(i == nt - 1)
        def _():
            inv_n = 1.0 / n_valid
            mean = sum_sl[...] * inv_n
            var = jnp.maximum(sq_sl[...] * inv_n - mean * mean, 0.0)
            scale = g_ref[...] * lax.rsqrt(var + eps)
            sc_sl[...] = scale
            sh_sl[...] = b_ref[...] - mean * scale

    @pl.when(p == 1)
    def _bn_relu():
        y = conv_sl[:, pl.ds(off, tile_p)] * sc_sl[...] + sh_sl[...]
        o_ref[...] = jnp.maximum(y, 0.0).astype(o_ref.dtype)


def conv_bn_relu_block(x_cnhw, w_oihw, bn_gamma, bn_beta, *, eps=1e-5,
                       tile_p_max=1024):
    """One [Conv2d(4,4,s=2,p=1,no bias) -> BN(train) -> ReLU] block.

    Input / output are channel-major (C, N, H, W) bf16.
    """
    Cin, N, H, W = x_cnhw.shape
    Cout = w_oihw.shape[0]
    Ho = (H + 2 - 4) // 2 + 1
    Wo = (W + 2 - 4) // 2 + 1
    P = N * Ho * Wo
    K = 16 * Cin

    # ---- glue: bf16 im2col in channel-major layout (no transposes) ----
    xp = jnp.pad(x_cnhw.astype(jnp.bfloat16), ((0, 0), (0, 0), (1, 1), (1, 1)))
    patches = [xp[:, :, ky:ky + 2 * Ho:2, kx:kx + 2 * Wo:2]
               for ky in range(4) for kx in range(4)]      # each (Cin,N,Ho,Wo)
    # k = (ky*4+kx)*Cin + c, p = n*Ho*Wo + ho*Wo + wo
    x_col = jnp.stack(patches, axis=0).reshape(K, P)

    tile_p = min(tile_p_max, _round_up(P, 128))            # lane-dense tiles
    P_pad = _round_up(P, tile_p)
    num_tiles = P_pad // tile_p
    # Zero-padded pixel columns give conv output exactly 0 (no bias), so they
    # contribute nothing to sum/sumsq; the stats divide by the real P.
    x_kp = jnp.pad(x_col, ((0, 0), (0, P_pad - P)))

    w_ck = jnp.transpose(w_oihw, (0, 2, 3, 1)).reshape(Cout, K).astype(jnp.bfloat16)

    # VMEM-resident conv slab budget (fused design). TODO(synk): fall back to a
    # two-phase HBM-roundtrip variant if very large activations ever overflow.
    slab_bytes = Cout * P_pad * 4
    assert slab_bytes <= 20 * 1024 * 1024, (
        f"conv slab {slab_bytes} B too large for VMEM-resident fused kernel")

    cparams = pltpu.CompilerParams(
        dimension_semantics=("arbitrary", "arbitrary"),
        vmem_limit_bytes=32 * 1024 * 1024,
    )

    y = pl.pallas_call(
        functools.partial(_fused_conv_bn_relu_kernel,
                          n_valid=float(P), eps=eps),
        out_shape=jax.ShapeDtypeStruct((Cout, P_pad), jnp.bfloat16),
        grid=(2, num_tiles),
        in_specs=[
            # x tiles only needed during phase 0; pin block 0 during phase 1.
            pl.BlockSpec((K, tile_p), lambda p, i: (0, i * (1 - p))),
            pl.BlockSpec((Cout, K), lambda p, i: (0, 0)),
            pl.BlockSpec((Cout, 1), lambda p, i: (0, 0)),
            pl.BlockSpec((Cout, 1), lambda p, i: (0, 0)),
        ],
        # Output only advances during phase 1 -> no garbage writebacks.
        out_specs=pl.BlockSpec((Cout, tile_p), lambda p, i: (0, i * p)),
        scratch_shapes=[
            pltpu.VMEM((Cout, P_pad), jnp.float32),   # resident conv slab
            pltpu.VMEM((Cout, 1), jnp.float32),       # sum
            pltpu.VMEM((Cout, 1), jnp.float32),       # sum of squares
            pltpu.VMEM((Cout, 1), jnp.float32),       # scale
            pltpu.VMEM((Cout, 1), jnp.float32),       # shift
        ],
        compiler_params=cparams,
    )(x_kp, w_ck,
      bn_gamma.reshape(Cout, 1).astype(jnp.float32),
      bn_beta.reshape(Cout, 1).astype(jnp.float32))

    return y[:, :P].reshape(Cout, N, Ho, Wo)   # stay channel-major, bf16


def cnn_forward(x_nchw, conv_weights, bn_gammas, bn_betas, eps=1e-5):
    # One layout change at entry: NCHW -> CNHW (channel-major), bf16.
    out = jnp.transpose(x_nchw, (1, 0, 2, 3)).astype(jnp.bfloat16)
    for w, g, b in zip(conv_weights, bn_gammas, bn_betas):
        out = conv_bn_relu_block(out, w, g, b, eps=eps)
    # One layout change at exit: CNHW -> NCHW, f32 (matches PyTorch dtype).
    return jnp.transpose(out, (1, 0, 2, 3)).astype(jnp.float32)


def ref_forward(x, conv_weights, bn_gammas, bn_betas, eps=1e-5):
    """Pure-JAX reference matching the PyTorch forward (training-mode BN)."""
    dn = ('NCHW', 'OIHW', 'NCHW')
    out = x
    for w, g, b in zip(conv_weights, bn_gammas, bn_betas):
        out = lax.conv_general_dilated(out, w, (2, 2), ((1, 1), (1, 1)),
                                       dimension_numbers=dn,
                                       precision=lax.Precision.HIGHEST)
        mean = out.mean(axis=(0, 2, 3), keepdims=True)
        var = ((out - mean) ** 2).mean(axis=(0, 2, 3), keepdims=True)
        out = (out - mean) * lax.rsqrt(var + eps)
        out = g[None, :, None, None] * out + b[None, :, None, None]
        out = jnp.maximum(out, 0.0)
    return out


if __name__ == "__main__":
    N, C_IN, H, W = 2, 3, 16, 16
    n_blocks, filter_size = 2, 32

    key = jax.random.PRNGKey(0)
    keys = jax.random.split(key, n_blocks + 1)
    x = jax.random.normal(keys[0], (N, C_IN, H, W), jnp.float32)

    # reset(): kaiming_uniform on conv weights (bound = sqrt(6 / fan_in)),
    # BatchNorm2d default affine params (weight=1, bias=0).
    conv_weights, bn_gammas, bn_betas = [], [], []
    cin = C_IN
    for i in range(n_blocks):
        fan_in = cin * 4 * 4
        bound = math.sqrt(6.0 / fan_in)
        w = jax.random.uniform(keys[i + 1], (filter_size, cin, 4, 4),
                               jnp.float32, -bound, bound)
        conv_weights.append(w)
        bn_gammas.append(jnp.ones((filter_size,), jnp.float32))
        bn_betas.append(jnp.zeros((filter_size,), jnp.float32))
        cin = filter_size

    fwd = jax.jit(cnn_forward)
    out = jax.block_until_ready(fwd(x, conv_weights, bn_gammas, bn_betas))
    ref = ref_forward(x, conv_weights, bn_gammas, bn_betas)

    expect_shape = (N, filter_size, H // (2 ** n_blocks), W // (2 ** n_blocks))
    assert out.shape == expect_shape, (out.shape, expect_shape)
    # bf16 matmul operands + bf16 inter-block activations vs f32 reference.
    max_err = float(jnp.max(jnp.abs(out - ref)))
    assert max_err < 5e-2, f"max abs err {max_err}"
    print("KERNEL_OK")
</pallas_src>

<mosaic_0001>
module attributes {stable_mosaic.version = 11 : i64} {
  func.func @_fused_conv_bn_relu_kernel(%arg0: i32, %arg1: i32, %arg2: memref<48x128xbf16, #tpu.memory_space<vmem>>, %arg3: memref<32x48xbf16, #tpu.memory_space<vmem>>, %arg4: memref<32x1xf32, #tpu.memory_space<vmem>>, %arg5: memref<32x1xf32, #tpu.memory_space<vmem>>, %arg6: memref<32x128xbf16, #tpu.memory_space<vmem>>, %arg7: memref<32x128xf32, #tpu.memory_space<vmem>>, %arg8: memref<32x1xf32, #tpu.memory_space<vmem>>, %arg9: memref<32x1xf32, #tpu.memory_space<vmem>>, %arg10: memref<32x1xf32, #tpu.memory_space<vmem>>, %arg11: memref<32x1xf32, #tpu.memory_space<vmem>>) attributes {dimension_semantics = [#tpu.dimension_semantics<arbitrary>, #tpu.dimension_semantics<arbitrary>], iteration_bounds = array<i64: 2, 1>, scalar_prefetch = 0 : i64, scratch_operands = 5 : i64, tpu.core_type = #tpu.core_type<tc>, window_params = [{transform_indices = @transform_0, window_bounds = array<i64: 48, 128>}, {pipeline_mode = #tpu.pipeline_mode<synchronous>, transform_indices = @transform_1, window_bounds = array<i64: 32, 48>}, {pipeline_mode = #tpu.pipeline_mode<synchronous>, transform_indices = @transform_2, window_bounds = array<i64: 32, 1>}, {pipeline_mode = #tpu.pipeline_mode<synchronous>, transform_indices = @transform_3, window_bounds = array<i64: 32, 1>}, {transform_indices = @transform_4, window_bounds = array<i64: 32, 128>}]} {
    %c128_i32 = arith.constant 128 : i32
    %0 = arith.muli %arg1, %c128_i32 : i32
    %1 = tpu.assume_multiple %0, 128 : i32
    %c0_i32 = arith.constant 0 : i32
    %2 = arith.cmpi eq, %arg0, %c0_i32 : i32
    %3 = arith.extui %2 : i1 to i32
    %c0_i32_0 = arith.constant 0 : i32
    %4 = arith.cmpi ne, %3, %c0_i32_0 : i32
    scf.if %4 {
      %c0_i32_2 = arith.constant 0 : i32
      %8 = arith.cmpi eq, %arg1, %c0_i32_2 : i32
      %9 = arith.extui %8 : i1 to i32
      %c0_i32_3 = arith.constant 0 : i32
      %10 = arith.cmpi ne, %9, %c0_i32_3 : i32
      scf.if %10 {
        %cst_20 = arith.constant 0.000000e+00 : f32
        %30 = vector.broadcast %cst_20 : f32 to vector<32x1xf32>
        %c0_21 = arith.constant 0 : index
        %c0_22 = arith.constant 0 : index
        %31 = vector.load %arg8[%c0_21, %c0_22] : memref<32x1xf32, #tpu.memory_space<vmem>>, vector<32x1xf32>
        tpu.vector_store %arg8[%c0_21, %c0_22], %30 {strides = array<i32>} : memref<32x1xf32, #tpu.memory_space<vmem>>, vector<32x1xf32>,
        %cst_23 = arith.constant 0.000000e+00 : f32
        %32 = vector.broadcast %cst_23 : f32 to vector<32x1xf32>
        %c0_24 = arith.constant 0 : index
        %c0_25 = arith.constant 0 : index
        %33 = vector.load %arg9[%c0_24, %c0_25] : memref<32x1xf32, #tpu.memory_space<vmem>>, vector<32x1xf32>
        tpu.vector_store %arg9[%c0_24, %c0_25], %32 {strides = array<i32>} : memref<32x1xf32, #tpu.memory_space<vmem>>, vector<32x1xf32>,
      } else {
      }
      %c0 = arith.constant 0 : index
      %c0_4 = arith.constant 0 : index
      %11 = vector.load %arg3[%c0, %c0_4] : memref<32x48xbf16, #tpu.memory_space<vmem>>, vector<32x48xbf16>
      %c0_5 = arith.constant 0 : index
      %c0_6 = arith.constant 0 : index
      %12 = vector.load %arg2[%c0_5, %c0_6] : memref<48x128xbf16, #tpu.memory_space<vmem>>, vector<48x128xbf16>
      %cst = arith.constant dense<0.000000e+00> : vector<32x128xf32>
      %13 = tpu.matmul %11, %12, %cst {dimension_numbers = #tpu.dot_dimension_numbers<[1], [0], [0], [1], [0, 0, 1, 1], [], []>} : vector<32x48xbf16>, vector<48x128xbf16>, vector<32x128xf32> -> vector<32x128xf32>
      %c0_7 = arith.constant 0 : index
      %14 = arith.index_cast %1 : i32 to index
      %15 = vector.load %arg7[%c0_7, %14] : memref<32x128xf32, #tpu.memory_space<vmem>>, vector<32x128xf32>
      tpu.vector_store %arg7[%c0_7, %14], %13 {strides = array<i32>} : memref<32x128xf32, #tpu.memory_space<vmem>>, vector<32x128xf32>,
      %c0_8 = arith.constant 0 : index
      %c0_9 = arith.constant 0 : index
      %16 = vector.load %arg8[%c0_8, %c0_9] : memref<32x1xf32, #tpu.memory_space<vmem>>, vector<32x1xf32>
      %cst_10 = arith.constant dense<0.000000e+00> : vector<32xf32>
      %17 = vector.multi_reduction <add>, %13, %cst_10 [1] : vector<32x128xf32> to vector<32xf32>
      %18 = vector.shape_cast %17 : vector<32xf32> to vector<32x1xf32>
      %19 = arith.addf %16, %18 : vector<32x1xf32>
      %c0_11 = arith.constant 0 : index
      %c0_12 = arith.constant 0 : index
      %20 = vector.load %arg8[%c0_11, %c0_12] : memref<32x1xf32, #tpu.memory_space<vmem>>, vector<32x1xf32>
      tpu.vector_store %arg8[%c0_11, %c0_12], %19 {strides = array<i32>} : memref<32x1xf32, #tpu.memory_space<vmem>>, vector<32x1xf32>,
      %c0_13 = arith.constant 0 : index
      %c0_14 = arith.constant 0 : index
      %21 = vector.load %arg9[%c0_13, %c0_14] : memref<32x1xf32, #tpu.memory_space<vmem>>, vector<32x1xf32>
      %22 = arith.mulf %13, %13 : vector<32x128xf32>
      %cst_15 = arith.constant dense<0.000000e+00> : vector<32xf32>
      %23 = vector.multi_reduction <add>, %22, %cst_15 [1] : vector<32x128xf32> to vector<32xf32>
      %24 = vector.shape_cast %23 : vector<32xf32> to vector<32x1xf32>
      %25 = arith.addf %21, %24 : vector<32x1xf32>
      %c0_16 = arith.constant 0 : index
      %c0_17 = arith.constant 0 : index
      %26 = vector.load %arg9[%c0_16, %c0_17] : memref<32x1xf32, #tpu.memory_space<vmem>>, vector<32x1xf32>
      tpu.vector_store %arg9[%c0_16, %c0_17], %25 {strides = array<i32>} : memref<32x1xf32, #tpu.memory_space<vmem>>, vector<32x1xf32>,
      %c0_i32_18 = arith.constant 0 : i32
      %27 = arith.cmpi eq, %arg1, %c0_i32_18 : i32
      %28 = arith.extui %27 : i1 to i32
      %c0_i32_19 = arith.constant 0 : i32
      %29 = arith.cmpi ne, %28, %c0_i32_19 : i32
      scf.if %29 {
        %c0_20 = arith.constant 0 : index
        %c0_21 = arith.constant 0 : index
        %30 = vector.load %arg8[%c0_20, %c0_21] : memref<32x1xf32, #tpu.memory_space<vmem>>, vector<32x1xf32>
        %cst_22 = arith.constant 7.812500e-03 : f32
        %31 = vector.broadcast %cst_22 : f32 to vector<32x1xf32>
        %32 = arith.mulf %30, %31 : vector<32x1xf32>
        %c0_23 = arith.constant 0 : index
        %c0_24 = arith.constant 0 : index
        %33 = vector.load %arg9[%c0_23, %c0_24] : memref<32x1xf32, #tpu.memory_space<vmem>>, vector<32x1xf32>
        %cst_25 = arith.constant 7.812500e-03 : f32
        %34 = vector.broadcast %cst_25 : f32 to vector<32x1xf32>
        %35 = arith.mulf %33, %34 : vector<32x1xf32>
        %36 = arith.mulf %32, %32 : vector<32x1xf32>
        %37 = arith.subf %35, %36 : vector<32x1xf32>
        %cst_26 = arith.constant 0.000000e+00 : f32
        %38 = vector.broadcast %cst_26 : f32 to vector<32x1xf32>
        %39 = arith.maximumf %37, %38 : vector<32x1xf32>
        %c0_27 = arith.constant 0 : index
        %c0_28 = arith.constant 0 : index
        %40 = vector.load %arg4[%c0_27, %c0_28] : memref<32x1xf32, #tpu.memory_space<vmem>>, vector<32x1xf32>
        %cst_29 = arith.constant 9.99999974E-6 : f32
        %41 = vector.broadcast %cst_29 : f32 to vector<32x1xf32>
        %42 = arith.addf %39, %41 : vector<32x1xf32>
        %43 = math.rsqrt %42 : vector<32x1xf32>
        %44 = arith.mulf %40, %43 : vector<32x1xf32>
        %c0_30 = arith.constant 0 : index
        %c0_31 = arith.constant 0 : index
        %45 = vector.load %arg10[%c0_30, %c0_31] : memref<32x1xf32, #tpu.memory_space<vmem>>, vector<32x1xf32>
        tpu.vector_store %arg10[%c0_30, %c0_31], %44 {strides = array<i32>} : memref<32x1xf32, #tpu.memory_space<vmem>>, vector<32x1xf32>,
        %c0_32 = arith.constant 0 : index
        %c0_33 = arith.constant 0 : index
        %46 = vector.load %arg5[%c0_32, %c0_33] : memref<32x1xf32, #tpu.memory_space<vmem>>, vector<32x1xf32>
        %47 = arith.mulf %32, %44 : vector<32x1xf32>
        %48 = arith.subf %46, %47 : vector<32x1xf32>
        %c0_34 = arith.constant 0 : index
        %c0_35 = arith.constant 0 : index
        %49 = vector.load %arg11[%c0_34, %c0_35] : memref<32x1xf32, #tpu.memory_space<vmem>>, vector<32x1xf32>
        tpu.vector_store %arg11[%c0_34, %c0_35], %48 {strides = array<i32>} : memref<32x1xf32, #tpu.memory_space<vmem>>, vector<32x1xf32>,
      } else {
      }
    } else {
    }
    %c1_i32 = arith.constant 1 : i32
    %5 = arith.cmpi eq, %arg0, %c1_i32 : i32
    %6 = arith.extui %5 : i1 to i32
    %c0_i32_1 = arith.constant 0 : i32
    %7 = arith.cmpi ne, %6, %c0_i32_1 : i32
    scf.if %7 {
      %c0 = arith.constant 0 : index
      %8 = arith.index_cast %1 : i32 to index
      %9 = vector.load %arg7[%c0, %8] : memref<32x128xf32, #tpu.memory_space<vmem>>, vector<32x128xf32>
      %c0_2 = arith.constant 0 : index
      %c0_3 = arith.constant 0 : index
      %10 = vector.load %arg10[%c0_2, %c0_3] : memref<32x1xf32, #tpu.memory_space<vmem>>, vector<32x1xf32>
      %11 = vector.broadcast %10 : vector<32x1xf32> to vector<32x128xf32>
      %12 = arith.mulf %9, %11 : vector<32x128xf32>
      %c0_4 = arith.constant 0 : index
      %c0_5 = arith.constant 0 : index
      %13 = vector.load %arg11[%c0_4, %c0_5] : memref<32x1xf32, #tpu.memory_space<vmem>>, vector<32x1xf32>
      %14 = vector.broadcast %13 : vector<32x1xf32> to vector<32x128xf32>
      %15 = arith.addf %12, %14 : vector<32x128xf32>
      %cst = arith.constant 0.000000e+00 : f32
      %16 = vector.broadcast %cst : f32 to vector<32x128xf32>
      %17 = arith.maximumf %15, %16 : vector<32x128xf32>
      %18 = arith.truncf %17 : vector<32x128xf32> to vector<32x128xbf16>
      %c0_6 = arith.constant 0 : index
      %c0_7 = arith.constant 0 : index
      %19 = vector.load %arg6[%c0_6, %c0_7] : memref<32x128xbf16, #tpu.memory_space<vmem>>, vector<32x128xbf16>
      tpu.vector_store %arg6[%c0_6, %c0_7], %18 {strides = array<i32>} : memref<32x128xbf16, #tpu.memory_space<vmem>>, vector<32x128xbf16>,
    } else {
    }
    return
  }
  func.func @transform_0(%arg0: i32, %arg1: i32) -> (i32, i32) {
    %c1_i32 = arith.constant 1 : i32
    %0 = arith.subi %c1_i32, %arg0 : i32
    %1 = arith.muli %arg1, %0 : i32
    %c0_i32 = arith.constant 0 : i32
    %c0_i32_0 = arith.constant 0 : i32
    return %c0_i32, %1 : i32, i32
  }
  func.func @transform_1(%arg0: i32, %arg1: i32) -> (i32, i32) {
    %c0_i32 = arith.constant 0 : i32
    %c0_i32_0 = arith.constant 0 : i32
    %c0_i32_1 = arith.constant 0 : i32
    return %c0_i32, %c0_i32_0 : i32, i32
  }
  func.func @transform_2(%arg0: i32, %arg1: i32) -> (i32, i32) {
    %c0_i32 = arith.constant 0 : i32
    %c0_i32_0 = arith.constant 0 : i32
    %c0_i32_1 = arith.constant 0 : i32
    return %c0_i32, %c0_i32_0 : i32, i32
  }
  func.func @transform_3(%arg0: i32, %arg1: i32) -> (i32, i32) {
    %c0_i32 = arith.constant 0 : i32
    %c0_i32_0 = arith.constant 0 : i32
    %c0_i32_1 = arith.constant 0 : i32
    return %c0_i32, %c0_i32_0 : i32, i32
  }
  func.func @transform_4(%arg0: i32, %arg1: i32) -> (i32, i32) {
    %0 = arith.muli %arg1, %arg0 : i32
    %c0_i32 = arith.constant 0 : i32
    %c0_i32_0 = arith.constant 0 : i32
    return %c0_i32, %0 : i32, i32
  }
}

module attributes {stable_mosaic.version = 11 : i64} {
  func.func @_fused_conv_bn_relu_kernel(%arg0: i32, %arg1: i32, %arg2: memref<512x128xbf16, #tpu.memory_space<vmem>>, %arg3: memref<32x512xbf16, #tpu.memory_space<vmem>>, %arg4: memref<32x1xf32, #tpu.memory_space<vmem>>, %arg5: memref<32x1xf32, #tpu.memory_space<vmem>>, %arg6: memref<32x128xbf16, #tpu.memory_space<vmem>>, %arg7: memref<32x128xf32, #tpu.memory_space<vmem>>, %arg8: memref<32x1xf32, #tpu.memory_space<vmem>>, %arg9: memref<32x1xf32, #tpu.memory_space<vmem>>, %arg10: memref<32x1xf32, #tpu.memory_space<vmem>>, %arg11: memref<32x1xf32, #tpu.memory_space<vmem>>) attributes {dimension_semantics = [#tpu.dimension_semantics<arbitrary>, #tpu.dimension_semantics<arbitrary>], iteration_bounds = array<i64: 2, 1>, scalar_prefetch = 0 : i64, scratch_operands = 5 : i64, tpu.core_type = #tpu.core_type<tc>, window_params = [{transform_indices = @transform_0, window_bounds = array<i64: 512, 128>}, {pipeline_mode = #tpu.pipeline_mode<synchronous>, transform_indices = @transform_1, window_bounds = array<i64: 32, 512>}, {pipeline_mode = #tpu.pipeline_mode<synchronous>, transform_indices = @transform_2, window_bounds = array<i64: 32, 1>}, {pipeline_mode = #tpu.pipeline_mode<synchronous>, transform_indices = @transform_3, window_bounds = array<i64: 32, 1>}, {transform_indices = @transform_4, window_bounds = array<i64: 32, 128>}]} {
    %c128_i32 = arith.constant 128 : i32
    %0 = arith.muli %arg1, %c128_i32 : i32
    %1 = tpu.assume_multiple %0, 128 : i32
    %c0_i32 = arith.constant 0 : i32
    %2 = arith.cmpi eq, %arg0, %c0_i32 : i32
    %3 = arith.extui %2 : i1 to i32
    %c0_i32_0 = arith.constant 0 : i32
    %4 = arith.cmpi ne, %3, %c0_i32_0 : i32
    scf.if %4 {
      %c0_i32_2 = arith.constant 0 : i32
      %8 = arith.cmpi eq, %arg1, %c0_i32_2 : i32
      %9 = arith.extui %8 : i1 to i32
      %c0_i32_3 = arith.constant 0 : i32
      %10 = arith.cmpi ne, %9, %c0_i32_3 : i32
      scf.if %10 {
        %cst_20 = arith.constant 0.000000e+00 : f32
        %30 = vector.broadcast %cst_20 : f32 to vector<32x1xf32>
        %c0_21 = arith.constant 0 : index
        %c0_22 = arith.constant 0 : index
        %31 = vector.load %arg8[%c0_21, %c0_22] : memref<32x1xf32, #tpu.memory_space<vmem>>, vector<32x1xf32>
        tpu.vector_store %arg8[%c0_21, %c0_22], %30 {strides = array<i32>} : memref<32x1xf32, #tpu.memory_space<vmem>>, vector<32x1xf32>,
        %cst_23 = arith.constant 0.000000e+00 : f32
        %32 = vector.broadcast %cst_23 : f32 to vector<32x1xf32>
        %c0_24 = arith.constant 0 : index
        %c0_25 = arith.constant 0 : index
        %33 = vector.load %arg9[%c0_24, %c0_25] : memref<32x1xf32, #tpu.memory_space<vmem>>, vector<32x1xf32>
        tpu.vector_store %arg9[%c0_24, %c0_25], %32 {strides = array<i32>} : memref<32x1xf32, #tpu.memory_space<vmem>>, vector<32x1xf32>,
      } else {
      }
      %c0 = arith.constant 0 : index
      %c0_4 = arith.constant 0 : index
      %11 = vector.load %arg3[%c0, %c0_4] : memref<32x512xbf16, #tpu.memory_space<vmem>>, vector<32x512xbf16>
      %c0_5 = arith.constant 0 : index
      %c0_6 = arith.constant 0 : index
      %12 = vector.load %arg2[%c0_5, %c0_6] : memref<512x128xbf16, #tpu.memory_space<vmem>>, vector<512x128xbf16>
      %cst = arith.constant dense<0.000000e+00> : vector<32x128xf32>
      %13 = tpu.matmul %11, %12, %cst {dimension_numbers = #tpu.dot_dimension_numbers<[1], [0], [0], [1], [0, 0, 1, 1], [], []>} : vector<32x512xbf16>, vector<512x128xbf16>, vector<32x128xf32> -> vector<32x128xf32>
      %c0_7 = arith.constant 0 : index
      %14 = arith.index_cast %1 : i32 to index
      %15 = vector.load %arg7[%c0_7, %14] : memref<32x128xf32, #tpu.memory_space<vmem>>, vector<32x128xf32>
      tpu.vector_store %arg7[%c0_7, %14], %13 {strides = array<i32>} : memref<32x128xf32, #tpu.memory_space<vmem>>, vector<32x128xf32>,
      %c0_8 = arith.constant 0 : index
      %c0_9 = arith.constant 0 : index
      %16 = vector.load %arg8[%c0_8, %c0_9] : memref<32x1xf32, #tpu.memory_space<vmem>>, vector<32x1xf32>
      %cst_10 = arith.constant dense<0.000000e+00> : vector<32xf32>
      %17 = vector.multi_reduction <add>, %13, %cst_10 [1] : vector<32x128xf32> to vector<32xf32>
      %18 = vector.shape_cast %17 : vector<32xf32> to vector<32x1xf32>
      %19 = arith.addf %16, %18 : vector<32x1xf32>
      %c0_11 = arith.constant 0 : index
      %c0_12 = arith.constant 0 : index
      %20 = vector.load %arg8[%c0_11, %c0_12] : memref<32x1xf32, #tpu.memory_space<vmem>>, vector<32x1xf32>
      tpu.vector_store %arg8[%c0_11, %c0_12], %19 {strides = array<i32>} : memref<32x1xf32, #tpu.memory_space<vmem>>, vector<32x1xf32>,
      %c0_13 = arith.constant 0 : index
      %c0_14 = arith.constant 0 : index
      %21 = vector.load %arg9[%c0_13, %c0_14] : memref<32x1xf32, #tpu.memory_space<vmem>>, vector<32x1xf32>
      %22 = arith.mulf %13, %13 : vector<32x128xf32>
      %cst_15 = arith.constant dense<0.000000e+00> : vector<32xf32>
      %23 = vector.multi_reduction <add>, %22, %cst_15 [1] : vector<32x128xf32> to vector<32xf32>
      %24 = vector.shape_cast %23 : vector<32xf32> to vector<32x1xf32>
      %25 = arith.addf %21, %24 : vector<32x1xf32>
      %c0_16 = arith.constant 0 : index
      %c0_17 = arith.constant 0 : index
      %26 = vector.load %arg9[%c0_16, %c0_17] : memref<32x1xf32, #tpu.memory_space<vmem>>, vector<32x1xf32>
      tpu.vector_store %arg9[%c0_16, %c0_17], %25 {strides = array<i32>} : memref<32x1xf32, #tpu.memory_space<vmem>>, vector<32x1xf32>,
      %c0_i32_18 = arith.constant 0 : i32
      %27 = arith.cmpi eq, %arg1, %c0_i32_18 : i32
      %28 = arith.extui %27 : i1 to i32
      %c0_i32_19 = arith.constant 0 : i32
      %29 = arith.cmpi ne, %28, %c0_i32_19 : i32
      scf.if %29 {
        %c0_20 = arith.constant 0 : index
        %c0_21 = arith.constant 0 : index
        %30 = vector.load %arg8[%c0_20, %c0_21] : memref<32x1xf32, #tpu.memory_space<vmem>>, vector<32x1xf32>
        %cst_22 = arith.constant 3.125000e-02 : f32
        %31 = vector.broadcast %cst_22 : f32 to vector<32x1xf32>
        %32 = arith.mulf %30, %31 : vector<32x1xf32>
        %c0_23 = arith.constant 0 : index
        %c0_24 = arith.constant 0 : index
        %33 = vector.load %arg9[%c0_23, %c0_24] : memref<32x1xf32, #tpu.memory_space<vmem>>, vector<32x1xf32>
        %cst_25 = arith.constant 3.125000e-02 : f32
        %34 = vector.broadcast %cst_25 : f32 to vector<32x1xf32>
        %35 = arith.mulf %33, %34 : vector<32x1xf32>
        %36 = arith.mulf %32, %32 : vector<32x1xf32>
        %37 = arith.subf %35, %36 : vector<32x1xf32>
        %cst_26 = arith.constant 0.000000e+00 : f32
        %38 = vector.broadcast %cst_26 : f32 to vector<32x1xf32>
        %39 = arith.maximumf %37, %38 : vector<32x1xf32>
        %c0_27 = arith.constant 0 : index
        %c0_28 = arith.constant 0 : index
        %40 = vector.load %arg4[%c0_27, %c0_28] : memref<32x1xf32, #tpu.memory_space<vmem>>, vector<32x1xf32>
        %cst_29 = arith.constant 9.99999974E-6 : f32
        %41 = vector.broadcast %cst_29 : f32 to vector<32x1xf32>
        %42 = arith.addf %39, %41 : vector<32x1xf32>
        %43 = math.rsqrt %42 : vector<32x1xf32>
        %44 = arith.mulf %40, %43 : vector<32x1xf32>
        %c0_30 = arith.constant 0 : index
        %c0_31 = arith.constant 0 : index
        %45 = vector.load %arg10[%c0_30, %c0_31] : memref<32x1xf32, #tpu.memory_space<vmem>>, vector<32x1xf32>
        tpu.vector_store %arg10[%c0_30, %c0_31], %44 {strides = array<i32>} : memref<32x1xf32, #tpu.memory_space<vmem>>, vector<32x1xf32>,
        %c0_32 = arith.constant 0 : index
        %c0_33 = arith.constant 0 : index
        %46 = vector.load %arg5[%c0_32, %c0_33] : memref<32x1xf32, #tpu.memory_space<vmem>>, vector<32x1xf32>
        %47 = arith.mulf %32, %44 : vector<32x1xf32>
        %48 = arith.subf %46, %47 : vector<32x1xf32>
        %c0_34 = arith.constant 0 : index
        %c0_35 = arith.constant 0 : index
        %49 = vector.load %arg11[%c0_34, %c0_35] : memref<32x1xf32, #tpu.memory_space<vmem>>, vector<32x1xf32>
        tpu.vector_store %arg11[%c0_34, %c0_35], %48 {strides = array<i32>} : memref<32x1xf32, #tpu.memory_space<vmem>>, vector<32x1xf32>,
      } else {
      }
    } else {
    }
    %c1_i32 = arith.constant 1 : i32
    %5 = arith.cmpi eq, %arg0, %c1_i32 : i32
    %6 = arith.extui %5 : i1 to i32
    %c0_i32_1 = arith.constant 0 : i32
    %7 = arith.cmpi ne, %6, %c0_i32_1 : i32
    scf.if %7 {
      %c0 = arith.constant 0 : index
      %8 = arith.index_cast %1 : i32 to index
      %9 = vector.load %arg7[%c0, %8] : memref<32x128xf32, #tpu.memory_space<vmem>>, vector<32x128xf32>
      %c0_2 = arith.constant 0 : index
      %c0_3 = arith.constant 0 : index
      %10 = vector.load %arg10[%c0_2, %c0_3] : memref<32x1xf32, #tpu.memory_space<vmem>>, vector<32x1xf32>
      %11 = vector.broadcast %10 : vector<32x1xf32> to vector<32x128xf32>
      %12 = arith.mulf %9, %11 : vector<32x128xf32>
      %c0_4 = arith.constant 0 : index
      %c0_5 = arith.constant 0 : index
      %13 = vector.load %arg11[%c0_4, %c0_5] : memref<32x1xf32, #tpu.memory_space<vmem>>, vector<32x1xf32>
      %14 = vector.broadcast %13 : vector<32x1xf32> to vector<32x128xf32>
      %15 = arith.addf %12, %14 : vector<32x128xf32>
      %cst = arith.constant 0.000000e+00 : f32
      %16 = vector.broadcast %cst : f32 to vector<32x128xf32>
      %17 = arith.maximumf %15, %16 : vector<32x128xf32>
      %18 = arith.truncf %17 : vector<32x128xf32> to vector<32x128xbf16>
      %c0_6 = arith.constant 0 : index
      %c0_7 = arith.constant 0 : index
      %19 = vector.load %arg6[%c0_6, %c0_7] : memref<32x128xbf16, #tpu.memory_space<vmem>>, vector<32x128xbf16>
      tpu.vector_store %arg6[%c0_6, %c0_7], %18 {strides = array<i32>} : memref<32x128xbf16, #tpu.memory_space<vmem>>, vector<32x128xbf16>,
    } else {
    }
    return
  }
  func.func @transform_0(%arg0: i32, %arg1: i32) -> (i32, i32) {
    %c1_i32 = arith.constant 1 : i32
    %0 = arith.subi %c1_i32, %arg0 : i32
    %1 = arith.muli %arg1, %0 : i32
    %c0_i32 = arith.constant 0 : i32
    %c0_i32_0 = arith.constant 0 : i32
    return %c0_i32, %1 : i32, i32
  }
  func.func @transform_1(%arg0: i32, %arg1: i32) -> (i32, i32) {
    %c0_i32 = arith.constant 0 : i32
    %c0_i32_0 = arith.constant 0 : i32
    %c0_i32_1 = arith.constant 0 : i32
    return %c0_i32, %c0_i32_0 : i32, i32
  }
  func.func @transform_2(%arg0: i32, %arg1: i32) -> (i32, i32) {
    %c0_i32 = arith.constant 0 : i32
    %c0_i32_0 = arith.constant 0 : i32
    %c0_i32_1 = arith.constant 0 : i32
    return %c0_i32, %c0_i32_0 : i32, i32
  }
  func.func @transform_3(%arg0: i32, %arg1: i32) -> (i32, i32) {
    %c0_i32 = arith.constant 0 : i32
    %c0_i32_0 = arith.constant 0 : i32
    %c0_i32_1 = arith.constant 0 : i32
    return %c0_i32, %c0_i32_0 : i32, i32
  }
  func.func @transform_4(%arg0: i32, %arg1: i32) -> (i32, i32) {
    %0 = arith.muli %arg1, %arg0 : i32
    %c0_i32 = arith.constant 0 : i32
    %c0_i32_0 = arith.constant 0 : i32
    return %c0_i32, %0 : i32, i32
  }
}

</mosaic_0001>

<bundles_post_ra>
// kernel: cnn_forward.2
= control target key start
LH: loop header
LB: loop body
LE: loop exit
PB: predicated region body
PF: predicated region fallthrough
CT: control target
= control target key end

     0   :  { %s749_s15 = smov 0   ;;  %s751_s16 = smov 0   ;;  %s869_s0 = inlined_call_operand.vmem [shape: bf16[48,128], index: 0, kind: input, shape index: {}]   ;;  %s870_s1 = inlined_call_operand.vmem [shape: bf16[32,48], index: 1, kind: input, shape index: {}]   ;;  %s871_s2 = inlined_call_operand.vmem [shape: f32[32,1], index: 2, kind: input, shape index: {}]   ;;  %s872_s3 = inlined_call_operand.vmem [shape: f32[32,1], index: 3, kind: input, shape index: {}]   ;;  %s873_s4 = inlined_call_operand.vmem [shape: bf16[32,128], index: 4, kind: output, shape index: {}]  }
   0x1   :  { %s753_s17 = smov 0  }
   0x2 LB: > { %s26_s18 = sadd.s32 1, %s716_s16  ;;  %p613_p0 = scmp.ge.s32.totalorder %s720_s17, 1  ;;  %s720_s17 = sphi %s753_s17, %s14_s17   ;;  %s716_s16 = sphi %s751_s16, %s875_s16   ;;  %s712_s15 = sphi %s749_s15, %s874_s15  }
   0x3   : > { %p28_p1 = scmp.ge.s32.totalorder %s26_s18, 2  ;;  %p183_p2 = scmp.lt.s32.totalorder %s720_s17, 3 }
   0x5   : > { %s877_s18 = smov (%p28_p1, %s26_s18), 0  ;;  %p184_p3 = pnand %p613_p0, %p183_p2 }
   0x6   : > { %p614_p4 = scmp.ne.s32.totalorder (!%p184_p3), %s712_s15, 0 }
   0x7   : > { %187 = sbr.rel (%p184_p3) target bundleno = 478 (0x1de), region = 36 }
   0xc   : > { %229 = sbr.rel (%p614_p4) target bundleno = 331 (0x14b), region = 40 }
  0x11   : > { %v646_v0 = vld [vmem:[%s869_s0 + $0x10] sm:$0xff]  ;;  %v645_v1 = vld [vmem:[%s869_s0 + $0x8] sm:$0xff]  ;;  %v644_v2 = vld [vmem:[%s869_s0] sm:$0xff]  ;;  %vm281_vm0 = vcmask 392192   ;;  %vm234_vm1 = vcmask 7168   ;;  %v722_v13 = vmov 0.0  }
  0x12   : > { %293 = vmatpush.bf16.msra.mxu0 %v646_v0  ;;  %658 = vmatpush.bf16.msra.mxu1 %v646_v0  ;;  %v642_v3 = vld [vmem:[%s870_s1] sm:$0xff]  ;;  %v643_v4 = vld [vmem:[%s870_s1 + $0x8] sm:$0xff]  ;;  %237 = vst.msk [vmem:[#allocation3 + $0x10] sm:$0xff] %vm234_vm1, %v722_v13 }
  0x13   : > { %235 = vst.msk [vmem:[#allocation3] sm:$0xff] %vm234_vm1, %v722_v13 }
  0x14   : > { %236 = vst.msk [vmem:[#allocation3 + $0x8] sm:$0xff] %vm234_vm1, %v722_v13 }
  0x15   : > { %238 = vst.msk [vmem:[#allocation3 + $0x18] sm:$0xff] %vm234_vm1, %v722_v13 }
  0x16   : > { %294 = vmatpush.bf16.msra.mxu0 %v645_v1  ;;  %659 = vmatpush.bf16.msra.mxu1 %v645_v1  ;;  %239 = vst.msk [vmem:[#allocation4] sm:$0xff] %vm234_vm1, %v722_v13 }
  0x17   : > { %240 = vst.msk [vmem:[#allocation4 + $0x8] sm:$0xff] %vm234_vm1, %v722_v13 }
  0x18   : > { %241 = vst.msk [vmem:[#allocation4 + $0x10] sm:$0xff] %vm234_vm1, %v722_v13 }
  0x19   : > { %242 = vst.msk [vmem:[#allocation4 + $0x18] sm:$0xff] %vm234_vm1, %v722_v13  ;;  %v316_v14 = vld [vmem:[#allocation3 + $0x10] sm:$0xff] }
  0x1a   : > { %295 = vmatpush.bf16.msra.mxu0 %v644_v2  ;;  %660 = vmatpush.bf16.msra.mxu1 %v644_v2  ;;  %v314_v15 = vld [vmem:[#allocation3] sm:$0xff] }
  0x1b   : > { %v315_v24 = vld [vmem:[#allocation3 + $0x8] sm:$0xff] }
  0x1c   : > { %v317_v23 = vld [vmem:[#allocation3 + $0x18] sm:$0xff] }
  0x1d   : > { %635 = vmatmul.msk.bf16.vlgmr.msra.gmra.mxu0 %vm281_vm0, %v642_v3  ;;  %636 = vmatmul.msk.bf16.vlgmr.msra.gmra.mxu1 %vm281_vm0, %v643_v4  ;;  %v335_v18 = vld [vmem:[#allocation4] sm:$0xff] }
  0x1e   : > { %v336_v27 = vld [vmem:[#allocation4 + $0x8] sm:$0xff] }
  0x1f   : > { %v337_v38 = vld [vmem:[#allocation4 + $0x10] sm:$0xff] }
  0x20   : > { %v338_v37 = vld [vmem:[#allocation4 + $0x18] sm:$0xff] }
  0x9a   : > { %v297_v5 = vpop.f32.mrf.mxu0  ;;  %v302_v6 = vpop.f32.mrf.mxu1 }
  0x9b   : > { %310 = vst [vmem:[#allocation2 + $0x10] sm:$0xff] %v297_v5  ;;  %322 = vadd.xlane.f32.xlu1 %v302_v6  ;;  %318 = vadd.xlane.f32.xlu0 %v297_v5  ;;  %v339_v7 = vmul.f32 %v297_v5, %v297_v5  ;;  %v341_v12 = vmul.f32 %v302_v6, %v302_v6 }
  0x9c   : > { %312 = vst [vmem:[#allocation2 + $0x18] sm:$0xff] %v302_v6 }
  0x9d   : > { %343 = vadd.xlane.f32.xlu2 %v339_v7 }
  0xa2   : > { %v299_v8 = vpop.f32.mrf.mxu0  ;;  %v304_v9 = vpop.f32.mrf.mxu1 }
  0xa3   : > { %311 = vst [vmem:[#allocation2] sm:$0xff] %v299_v8  ;;  %324 = vadd.xlane.f32.xlu1 %v304_v9  ;;  %320 = vadd.xlane.f32.xlu0 %v299_v8  ;;  %v340_v10 = vmul.f32 %v299_v8, %v299_v8  ;;  %v342_v11 = vmul.f32 %v304_v9, %v304_v9 }
  0xa4   : > { %313 = vst [vmem:[#allocation2 + $0x8] sm:$0xff] %v304_v9 }
  0xa5   : > { %345 = vadd.xlane.f32.xlu2 %v340_v10 }
  0xab   : > { %349 = vadd.xlane.f32.xlu1 %v342_v11  ;;  %347 = vadd.xlane.f32.xlu0 %v341_v12  ;;  %v390_v12 = vld [vmem:[%s871_s2] sm:$0xff] }
 0x10e   : > { %v323_v16 = vpop.xlane.xlu1 %322  ;;  %v319_v17 = vpop.xlane.xlu0 %318 }
 0x10f   : > { %v328_v19 = vadd.f32 %v323_v16, %v316_v14  ;;  %v326_v20 = vadd.f32 %v319_v17, %v314_v15 }
 0x110   : > { %v344_v21 = vpop.xlane.xlu2 %343 }
 0x111   : > { %333 = vst.msk [vmem:[#allocation3 + $0x10] sm:$0xff] %vm234_vm1, %v328_v19  ;;  %v351_v22 = vadd.f32 %v344_v21, %v335_v18  ;;  %v446_v19 = vld [vmem:[%s872_s3] sm:$0xff] }
 0x112   : > { %331 = vst.msk [vmem:[#allocation3] sm:$0xff] %vm234_vm1, %v326_v20 }
 0x113   : > { %355 = vst.msk [vmem:[#allocation4] sm:$0xff] %vm234_vm1, %v351_v22 }
 0x116   : > { %v325_v25 = vpop.xlane.xlu1 %324  ;;  %v321_v26 = vpop.xlane.xlu0 %320 }
 0x117   : > { %v329_v28 = vadd.f32 %v325_v25, %v317_v23  ;;  %v327_v29 = vadd.f32 %v321_v26, %v315_v24 }
 0x118   : > { %v346_v30 = vpop.xlane.xlu2 %345  ;;  %v364_v50 = vld [vmem:[#allocation3 + $0x10] sm:$0xff] }
 0x119   : > { %v362_v31 = vld [vmem:[#allocation3] sm:$0xff]  ;;  %334 = vst.msk [vmem:[#allocation3 + $0x18] sm:$0xff] %vm234_vm1, %v329_v28  ;;  %v352_v32 = vadd.f32 %v346_v30, %v336_v27  ;;  %v811_v54 = vmul.f32 0.0078125, %v364_v50  ;;  %v391_v28 = vld [vmem:[%s871_s2 + $0x8] sm:$0xff]  ;;  %v448_v50 = vld [vmem:[%s872_s3 + $0x10] sm:$0xff] }
 0x11a   : > { %v797_v33 = vmul.f32 0.0078125, %v362_v31  ;;  %v370_v34 = vld [vmem:[#allocation4] sm:$0xff]  ;;  %332 = vst.msk [vmem:[#allocation3 + $0x8] sm:$0xff] %vm234_vm1, %v327_v29 }
 0x11b   : > { %v374_v35 = vmul.f32 0.0078125, %v370_v34  ;;  %356 = vst.msk [vmem:[#allocation4 + $0x8] sm:$0xff] %vm234_vm1, %v352_v32  ;;  %v380_v62 = vmul.f32 %v811_v54, %v811_v54 }
 0x11c   : > { %v378_v36 = vmul.f32 %v797_v33, %v797_v33 }
 0x11e   : > { %v382_v39 = vsub.f32 %v374_v35, %v378_v36  ;;  %v350_v40 = vpop.xlane.xlu1 %349  ;;  %v348_v41 = vpop.xlane.xlu0 %347  ;;  %v447_v36 = vld [vmem:[%s872_s3 + $0x8] sm:$0xff] }
 0x11f   : > { %v354_v42 = vadd.f32 %v350_v40, %v338_v37  ;;  %v353_v43 = vadd.f32 %v348_v41, %v337_v38  ;;  %v392_v41 = vld [vmem:[%s871_s2 + $0x10] sm:$0xff] }
 0x120   : > { %v386_v44 = vmax.f32 %v382_v39, 0.0  ;;  %v365_v47 = vld [vmem:[#allocation3 + $0x18] sm:$0xff] }
 0x121   : > { %v363_v45 = vld [vmem:[#allocation3 + $0x8] sm:$0xff]  ;;  %358 = vst.msk [vmem:[#allocation4 + $0x18] sm:$0xff] %vm234_vm1, %v354_v42  ;;  %v809_v53 = vmul.f32 0.0078125, %v365_v47  ;;  %v393_v39 = vld [vmem:[%s871_s2 + $0x18] sm:$0xff] }
 0x122   : > { %v394_v46 = vadd.f32 1e-05, %v386_v44  ;;  %v804_v48 = vmul.f32 0.0078125, %v363_v45  ;;  %v371_v49 = vld [vmem:[#allocation4 + $0x8] sm:$0xff]  ;;  %357 = vst.msk [vmem:[#allocation4 + $0x10] sm:$0xff] %vm234_vm1, %v353_v43  ;;  %v449_v47 = vld [vmem:[%s872_s3 + $0x18] sm:$0xff] }
 0x123   : > { %v375_v51 = vmul.f32 0.0078125, %v371_v49  ;;  %v381_v58 = vmul.f32 %v809_v53, %v809_v53 }
 0x124   : > { %687 = vrsqrt.f32 %v394_v46  ;;  %v379_v52 = vmul.f32 %v804_v48, %v804_v48  ;;  %vm404_vm3 = vweird.f32 %v394_v46 }
 0x126   : > { %v383_v55 = vsub.f32 %v375_v51, %v379_v52 }
 0x128   : > { %v387_v56 = vmax.f32 %v383_v55, 0.0  ;;  %v373_v57 = vld [vmem:[#allocation4 + $0x18] sm:$0xff] }
 0x129   : > { %v377_v59 = vmul.f32 0.0078125, %v373_v57  ;;  %v372_v60 = vld [vmem:[#allocation4 + $0x10] sm:$0xff] }
 0x12a   : > { %v688_v61 = vpop.eup %687  ;;  %v395_v63 = vadd.f32 1e-05, %v387_v56  ;;  %v376_v0 = vmul.f32 0.0078125, %v372_v60 }
 0x12b   : > { %v399_v1 = vmul.f32 %v688_v61, %v394_v46  ;;  %v385_v2 = vsub.f32 %v377_v59, %v381_v58  ;;  %vm405_vm2 = vweird.f32 %v688_v61 }
 0x12c   : > { %689 = vrsqrt.f32 %v395_v63  ;;  %v384_v3 = vsub.f32 %v376_v0, %v380_v62  ;;  %vm406_vm4 = vmor %vm404_vm3, %vm405_vm2  ;;  %vm414_vm6 = vweird.f32 %v395_v63 }
 0x12d   : > { %v400_v4 = vmul.f32 %v688_v61, %v399_v1  ;;  %v389_v5 = vmax.f32 %v385_v2, 0.0 }
 0x12e   : > { %v388_v6 = vmax.f32 %v384_v3, 0.0 }
 0x12f   : > { %v401_v7 = vmul.f32 0.5, %v400_v4  ;;  %v397_v8 = vadd.f32 1e-05, %v389_v5 }
 0x130   : > { %v396_v9 = vadd.f32 1e-05, %v388_v6 }
 0x131   : > { %v402_v10 = vsub.f32 1.5, %v401_v7  ;;  %691 = vrsqrt.f32 %v397_v8  ;;  %vm434_vm10 = vweird.f32 %v397_v8 }
 0x132   : > { %v690_v11 = vpop.eup %689  ;;  %693 = vrsqrt.f32 %v396_v9  ;;  %vm424_vm12 = vweird.f32 %v396_v9 }
 0x133   : > { %v403_v13 = vmul.f32 %v688_v61, %v402_v10  ;;  %v409_v14 = vmul.f32 %v690_v11, %v395_v63  ;;  %vm415_vm5 = vweird.f32 %v690_v11 }
 0x134   : > { %vm416_vm7 = vmor %vm414_vm6, %vm415_vm5 }
 0x135   : > { %v407_v15 = vsel %vm406_vm4, %v688_v61, %v403_v13  ;;  %v410_v16 = vmul.f32 %v690_v11, %v409_v14 }
 0x136   : > { %v438_v17 = vmul.f32 %v407_v15, %v390_v12 }
 0x137   : > { %v692_v18 = vpop.eup %691  ;;  %v411_v20 = vmul.f32 0.5, %v410_v16 }
 0x138   : > { %v694_v21 = vpop.eup %693  ;;  %442 = vst.msk [vmem:[#allocation5] sm:$0xff] %vm234_vm1, %v438_v17  ;;  %v450_v22 = vmul.f32 %v438_v17, %v797_v33  ;;  %v429_v23 = vmul.f32 %v692_v18, %v397_v8  ;;  %vm435_vm8 = vweird.f32 %v692_v18 }
 0x139   : > { %v412_v24 = vsub.f32 1.5, %v411_v20  ;;  %v419_v25 = vmul.f32 %v694_v21, %v396_v9  ;;  %vm425_vm9 = vweird.f32 %v694_v21  ;;  %vm436_vm11 = vmor %vm434_vm10, %vm435_vm8 }
 0x13a   : > { %v454_v26 = vsub.f32 %v446_v19, %v450_v22  ;;  %v430_v27 = vmul.f32 %v692_v18, %v429_v23  ;;  %vm426_vm13 = vmor %vm424_vm12, %vm425_vm9 }
 0x13b   : > { %v413_v29 = vmul.f32 %v690_v11, %v412_v24  ;;  %v420_v30 = vmul.f32 %v694_v21, %v419_v25 }
 0x13c   : > { %458 = vst.msk [vmem:[#allocation6] sm:$0xff] %vm234_vm1, %v454_v26  ;;  %v431_v31 = vmul.f32 0.5, %v430_v27 }
 0x13d   : > { %v417_v32 = vsel %vm416_vm7, %v690_v11, %v413_v29  ;;  %v421_v34 = vmul.f32 0.5, %v420_v30 }
 0x13e   : > { %v439_v33 = vmul.f32 %v417_v32, %v391_v28  ;;  %v432_v35 = vsub.f32 1.5, %v431_v31 }
 0x13f   : > { %v422_v37 = vsub.f32 1.5, %v421_v34 }
 0x140   : > { %443 = vst.msk [vmem:[#allocation5 + $0x8] sm:$0xff] %vm234_vm1, %v439_v33  ;;  %v451_v38 = vmul.f32 %v439_v33, %v804_v48  ;;  %v433_v40 = vmul.f32 %v692_v18, %v432_v35 }
 0x141   : > { %v423_v42 = vmul.f32 %v694_v21, %v422_v37 }
 0x142   : > { %v455_v43 = vsub.f32 %v447_v36, %v451_v38  ;;  %v437_v44 = vsel %vm436_vm11, %v692_v18, %v433_v40 }
 0x143   : > { %v441_v45 = vmul.f32 %v437_v44, %v393_v39  ;;  %v427_v46 = vsel %vm426_vm13, %v694_v21, %v423_v42 }
 0x144   : > { %459 = vst.msk [vmem:[#allocation6 + $0x8] sm:$0xff] %vm234_vm1, %v455_v43  ;;  %v440_v48 = vmul.f32 %v427_v46, %v392_v41 }
 0x145   : > { %445 = vst.msk [vmem:[#allocation5 + $0x18] sm:$0xff] %vm234_vm1, %v441_v45  ;;  %v453_v49 = vmul.f32 %v441_v45, %v809_v53 }
 0x146   : > { %444 = vst.msk [vmem:[#allocation5 + $0x10] sm:$0xff] %vm234_vm1, %v440_v48  ;;  %v452_v51 = vmul.f32 %v440_v48, %v811_v54 }
 0x147   : > { %v457_v52 = vsub.f32 %v449_v47, %v453_v49 }
 0x148   : > { %v456_v55 = vsub.f32 %v448_v50, %v452_v51 }
 0x149   : > { %461 = vst.msk [vmem:[#allocation6 + $0x18] sm:$0xff] %vm234_vm1, %v457_v52 }
 0x14a   : > { %460 = vst.msk [vmem:[#allocation6 + $0x10] sm:$0xff] %vm234_vm1, %v456_v55 }
 0x14b PF: > { %p637_p5 = scmp.ne.s32.totalorder %s712_s15, 1 }
 0x14d   : > { %465 = sbr.rel (%p637_p5) target bundleno = 478 (0x1de), region = 52 }
 0x152   : > { %v475_v56 = vld [vmem:[#allocation5 + $0x10] sm:$0xff]  ;;  %v473_v53 = vld [vmem:[#allocation5] sm:$0xff]  ;;  %v723_v57 = vmov 0   ;;  %v476_v54 = vld [vmem:[#allocation5 + $0x18] sm:$0xff] }
 0x153   : > { %696 = vset.pattern.permute.xlu1 %v723_v57  ;;  %695 = vset.pattern.permute.xlu0 %v723_v57  ;;  %v501_v58 = vld [vmem:[#allocation6] sm:$0xff]  ;;  %v474_v59 = vld [vmem:[#allocation5 + $0x8] sm:$0xff]  ;;  %v504_v61 = vld [vmem:[#allocation6 + $0x18] sm:$0xff] }
 0x154   : > { %489 = vperm.xlu1 %696, %v475_v56   ;;  %479 = vperm.xlu0 %695, %v473_v53   ;;  %v502_v60 = vld [vmem:[#allocation6 + $0x8] sm:$0xff]  ;;  %v503_v62 = vld [vmem:[#allocation6 + $0x10] sm:$0xff]  ;;  %v470_v4 = vld [vmem:[#allocation2] sm:$0xff] }
 0x155   : > { %697 = vset.pattern.permute.xlu2 %v723_v57  ;;  %v469_v2 = vld [vmem:[#allocation2 + $0x10] sm:$0xff]  ;;  %v471_v11 = vld [vmem:[#allocation2 + $0x18] sm:$0xff]  ;;  %v472_v12 = vld [vmem:[#allocation2 + $0x8] sm:$0xff] }
 0x156   : > { %507 = vperm.xlu2 %697, %v501_v58  }
 0x15c   : > { %494 = vperm.xlu1 %696, %v476_v54   ;;  %484 = vperm.xlu0 %695, %v474_v59  }
 0x15e   : > { %512 = vperm.xlu2 %697, %v502_v60  }
 0x164   : > { %522 = vperm.xlu1 %696, %v504_v61   ;;  %517 = vperm.xlu0 %695, %v503_v62  }
 0x1b0   : > { %v508_v63 = vpop.permute.xlu2 %507 }
 0x1b8   : > { %v513_v9 = vpop.permute.xlu2 %512 }
 0x1c6   : > { %v490_v0 = vpop.permute.xlu1 %489  ;;  %v480_v1 = vpop.permute.xlu0 %479 }
 0x1c7   : > { %v497_v3 = vmul.f32 %v480_v1, %v469_v2  ;;  %v499_v15 = vmul.f32 %v490_v0, %v471_v11 }
 0x1c9   : > { %v525_v7 = vadd.f32 %v508_v63, %v497_v3 }
 0x1cb   : > { %v529_v13 = vmax.f32 %v525_v7, 0.0 }
 0x1ce   : > { %v495_v5 = vpop.permute.xlu1 %494  ;;  %v485_v6 = vpop.permute.xlu0 %484 }
 0x1cf   : > { %v498_v8 = vmul.f32 %v485_v6, %v470_v4  ;;  %v500_v16 = vmul.f32 %v495_v5, %v472_v12 }
 0x1d1   : > { %v526_v10 = vadd.f32 %v513_v9, %v498_v8 }
 0x1d3   : > { %v530_v14 = vmax.f32 %v526_v10, 0.0 }
 0x1d5   : > { %v650_v17 = vpack.c.bf16 %v530_v14, %v529_v13 }
 0x1d6   : > { %v523_v18 = vpop.permute.xlu1 %522  ;;  %v518_v19 = vpop.permute.xlu0 %517 }
 0x1d7   : > { %651 = vst [vmem:[%s873_s4] sm:$0xff] %v650_v17   ;;  %v528_v20 = vadd.f32 %v523_v18, %v500_v16  ;;  %v527_v21 = vadd.f32 %v518_v19, %v499_v15 }
 0x1d9   : > { %v532_v22 = vmax.f32 %v528_v20, 0.0  ;;  %v531_v23 = vmax.f32 %v527_v21, 0.0 }
 0x1db   : > { %v655_v24 = vpack.c.bf16 %v532_v22, %v531_v23 }
 0x1dd   : > { %657 = vst [vmem:[%s873_s4 + $0x8] sm:$0xff] %v655_v24  }
 0x1de PF: > { %s14_s17 = sadd.s32 1, %s720_s17   ;;  %s874_s15 = smov %s716_s16 }
 0x1df   : > { %p11_p6 = scmp.ge.s32.totalorder %s14_s17, 4   ;;  %s875_s16 = smov %s877_s18 }
 0x1e1   :  { %13 = sbr.rel (!%p11_p6) target bundleno = 2 (0x2), region = 84 }

// kernel: cnn_forward.3
= control target key start
LH: loop header
LB: loop body
LE: loop exit
PB: predicated region body
PF: predicated region fallthrough
CT: control target
= control target key end

     0   :  { %s1234_s15 = smov 0   ;;  %s1236_s16 = smov 0   ;;  %s1478_s0 = inlined_call_operand.vmem [shape: bf16[512,128], index: 0, kind: input, shape index: {}]   ;;  %s1479_s1 = inlined_call_operand.vmem [shape: bf16[32,512], index: 1, kind: input, shape index: {}]   ;;  %s1480_s2 = inlined_call_operand.vmem [shape: f32[32,1], index: 2, kind: input, shape index: {}]   ;;  %s1481_s3 = inlined_call_operand.vmem [shape: f32[32,1], index: 3, kind: input, shape index: {}]   ;;  %s1482_s4 = inlined_call_operand.vmem [shape: bf16[32,128], index: 4, kind: output, shape index: {}]  }
   0x1   :  { %s1238_s17 = smov 0  }
   0x2 LB: > { %s26_s18 = sadd.s32 1, %s1201_s16  ;;  %p928_p0 = scmp.ge.s32.totalorder %s1205_s17, 1  ;;  %s1205_s17 = sphi %s1238_s17, %s14_s17   ;;  %s1201_s16 = sphi %s1236_s16, %s1484_s16   ;;  %s1197_s15 = sphi %s1234_s15, %s1483_s15  }
   0x3   : > { %p28_p1 = scmp.ge.s32.totalorder %s26_s18, 2  ;;  %p183_p2 = scmp.lt.s32.totalorder %s1205_s17, 3 }
   0x5   : > { %s1486_s18 = smov (%p28_p1, %s26_s18), 0  ;;  %p184_p3 = pnand %p928_p0, %p183_p2 }
   0x6   : > { %p929_p4 = scmp.ne.s32.totalorder (!%p184_p3), %s1197_s15, 0 }
   0x7   : > { %187 = sbr.rel (%p184_p3) target bundleno = 525 (0x20d), region = 36 }
   0xc   : > { %228 = sbr.rel (%p929_p4) target bundleno = 378 (0x17a), region = 40 }
  0x11   : > { %v1110_v0 = vld [vmem:[%s1478_s0 + $0x38] sm:$0xff]  ;;  %v1109_v4 = vld [vmem:[%s1478_s0 + $0x30] sm:$0xff]  ;;  %v1108_v8 = vld [vmem:[%s1478_s0 + $0x28] sm:$0xff]  ;;  %vm233_vm0 = vcmask 7168  }
  0x12   : > { %v1118_v1 = vld [vmem:[%s1478_s0 + $0x78] sm:$0xff]  ;;  %546 = vmatpush.bf16.msra.mxu0 %v1110_v0  ;;  %v1117_v5 = vld [vmem:[%s1478_s0 + $0x70] sm:$0xff]  ;;  %v1116_v9 = vld [vmem:[%s1478_s0 + $0x68] sm:$0xff] }
  0x13   : > { %v1126_v2 = vld [vmem:[%s1478_s0 + $0xb8] sm:$0xff]  ;;  %565 = vmatpush.bf16.msra.mxu1 %v1118_v1  ;;  %v1125_v6 = vld [vmem:[%s1478_s0 + $0xb0] sm:$0xff]  ;;  %v1124_v10 = vld [vmem:[%s1478_s0 + $0xa8] sm:$0xff] }
  0x14   : > { %v1134_v3 = vld [vmem:[%s1478_s0 + $0xf8] sm:$0xff]  ;;  %584 = vmatpush.bf16.msra.mxu2 %v1126_v2  ;;  %v1133_v7 = vld [vmem:[%s1478_s0 + $0xf0] sm:$0xff]  ;;  %v1132_v11 = vld [vmem:[%s1478_s0 + $0xe8] sm:$0xff] }
  0x15   : > { %603 = vmatpush.bf16.msra.mxu3 %v1134_v3  ;;  %v1107_v12 = vld [vmem:[%s1478_s0 + $0x20] sm:$0xff]  ;;  %v1106_v16 = vld [vmem:[%s1478_s0 + $0x18] sm:$0xff]  ;;  %v1105_v20 = vld [vmem:[%s1478_s0 + $0x10] sm:$0xff] }
  0x16   : > { %547 = vmatpush.bf16.msra.mxu0 %v1109_v4  ;;  %v1115_v13 = vld [vmem:[%s1478_s0 + $0x60] sm:$0xff]  ;;  %v1114_v17 = vld [vmem:[%s1478_s0 + $0x58] sm:$0xff]  ;;  %v1113_v21 = vld [vmem:[%s1478_s0 + $0x50] sm:$0xff] }
  0x17   : > { %566 = vmatpush.bf16.msra.mxu1 %v1117_v5  ;;  %v1123_v14 = vld [vmem:[%s1478_s0 + $0xa0] sm:$0xff]  ;;  %v1122_v18 = vld [vmem:[%s1478_s0 + $0x98] sm:$0xff]  ;;  %v1121_v22 = vld [vmem:[%s1478_s0 + $0x90] sm:$0xff] }
  0x18   : > { %585 = vmatpush.bf16.msra.mxu2 %v1125_v6  ;;  %v1131_v15 = vld [vmem:[%s1478_s0 + $0xe0] sm:$0xff]  ;;  %v1130_v19 = vld [vmem:[%s1478_s0 + $0xd8] sm:$0xff]  ;;  %v1129_v23 = vld [vmem:[%s1478_s0 + $0xd0] sm:$0xff] }
  0x19   : > { %604 = vmatpush.bf16.msra.mxu3 %v1133_v7  ;;  %v1104_v24 = vld [vmem:[%s1478_s0 + $0x8] sm:$0xff]  ;;  %v1103_v28 = vld [vmem:[%s1478_s0] sm:$0xff]  ;;  %v1097_v33 = vld [vmem:[%s1479_s1 + $0xc] sm:$0xf0] }
  0x1a   : > { %548 = vmatpush.bf16.msra.mxu0 %v1108_v8  ;;  %v1112_v25 = vld [vmem:[%s1478_s0 + $0x48] sm:$0xff]  ;;  %v1111_v29 = vld [vmem:[%s1478_s0 + $0x40] sm:$0xff]  ;;  %v934_v35 = vld [vmem:[%s1479_s1 + $0x10] sm:$0xf0] }
  0x1b   : > { %567 = vmatpush.bf16.msra.mxu1 %v1116_v9  ;;  %v1120_v26 = vld [vmem:[%s1478_s0 + $0x88] sm:$0xff]  ;;  %v1119_v30 = vld [vmem:[%s1478_s0 + $0x80] sm:$0xff]  ;;  %v1098_v37 = vld [vmem:[%s1479_s1 + $0x14] sm:$0xf0] }
  0x1c   : > { %586 = vmatpush.bf16.msra.mxu2 %v1124_v10  ;;  %v1128_v27 = vld [vmem:[%s1478_s0 + $0xc8] sm:$0xff]  ;;  %v1127_v31 = vld [vmem:[%s1478_s0 + $0xc0] sm:$0xff]  ;;  %v942_v39 = vld [vmem:[%s1479_s1 + $0x18] sm:$0xf0] }
  0x1d   : > { %605 = vmatpush.bf16.msra.mxu3 %v1132_v11  ;;  %v932_v32 = vld [vmem:[%s1479_s1] sm:$0xf]  ;;  %v1095_v34 = vld [vmem:[%s1479_s1 + $0x4] sm:$0xf]  ;;  %v940_v36 = vld [vmem:[%s1479_s1 + $0x8] sm:$0xf] }
  0x1e   : > { %549 = vmatpush.bf16.msra.mxu0 %v1107_v12  ;;  %v1096_v38 = vld [vmem:[%s1479_s1 + $0xc] sm:$0xf]  ;;  %v933_v40 = vor.u32 %v1097_v33, %v932_v32  ;;  %v937_v41 = vor.u32 %v1095_v34, %v934_v35  ;;  %v941_v42 = vor.u32 %v1098_v37, %v940_v36  ;;  %v948_v44 = vld [vmem:[%s1479_s1 + $0x20] sm:$0xf]  ;;  %v1101_v45 = vld [vmem:[%s1479_s1 + $0x2c] sm:$0xf0] }
  0x1f   : > { %568 = vmatpush.bf16.msra.mxu1 %v1115_v13  ;;  %v945_v43 = vor.u32 %v1096_v38, %v942_v39  ;;  %v1099_v46 = vld [vmem:[%s1479_s1 + $0x24] sm:$0xf]  ;;  %v950_v47 = vld [vmem:[%s1479_s1 + $0x30] sm:$0xf0]  ;;  %v956_v48 = vld [vmem:[%s1479_s1 + $0x28] sm:$0xf]  ;;  %v949_v52 = vor.u32 %v1101_v45, %v948_v44 }
  0x20   : > { %587 = vmatpush.bf16.msra.mxu2 %v1123_v14  ;;  %v1102_v49 = vld [vmem:[%s1479_s1 + $0x34] sm:$0xf0]  ;;  %v1100_v50 = vld [vmem:[%s1479_s1 + $0x2c] sm:$0xf]  ;;  %v958_v51 = vld [vmem:[%s1479_s1 + $0x38] sm:$0xf0]  ;;  %v953_v53 = vor.u32 %v1099_v46, %v950_v47 }
  0x21   : > { %606 = vmatpush.bf16.msra.mxu3 %v1131_v15  ;;  %v957_v54 = vor.u32 %v1102_v49, %v956_v48  ;;  %v961_v55 = vor.u32 %v1100_v50, %v958_v51 }
  0x22   : > { %550 = vmatpush.bf16.msra.mxu0 %v1106_v16 }
  0x23   : > { %569 = vmatpush.bf16.msra.mxu1 %v1114_v17 }
  0x24   : > { %588 = vmatpush.bf16.msra.mxu2 %v1122_v18 }
  0x25   : > { %607 = vmatpush.bf16.msra.mxu3 %v1130_v19 }
  0x26   : > { %551 = vmatpush.bf16.msra.mxu0 %v1105_v20 }
  0x27   : > { %570 = vmatpush.bf16.msra.mxu1 %v1113_v21 }
  0x28   : > { %589 = vmatpush.bf16.msra.mxu2 %v1121_v22 }
  0x29   : > { %608 = vmatpush.bf16.msra.mxu3 %v1129_v23 }
  0x2a   : > { %552 = vmatpush.bf16.msra.mxu0 %v1104_v24  ;;  %v1207_v24 = vmov 0.0  }
  0x2b   : > { %571 = vmatpush.bf16.msra.mxu1 %v1112_v25  ;;  %234 = vst.msk [vmem:[#allocation3] sm:$0xff] %vm233_vm0, %v1207_v24 }
  0x2c   : > { %590 = vmatpush.bf16.msra.mxu2 %v1120_v26  ;;  %235 = vst.msk [vmem:[#allocation3 + $0x8] sm:$0xff] %vm233_vm0, %v1207_v24 }
  0x2d   : > { %609 = vmatpush.bf16.msra.mxu3 %v1128_v27  ;;  %236 = vst.msk [vmem:[#allocation3 + $0x10] sm:$0xff] %vm233_vm0, %v1207_v24 }
  0x2e   : > { %553 = vmatpush.bf16.msra.mxu0 %v1103_v28  ;;  %237 = vst.msk [vmem:[#allocation3 + $0x18] sm:$0xff] %vm233_vm0, %v1207_v24 }
  0x2f   : > { %572 = vmatpush.bf16.msra.mxu1 %v1111_v29  ;;  %238 = vst.msk [vmem:[#allocation4] sm:$0xff] %vm233_vm0, %v1207_v24 }
  0x30   : > { %591 = vmatpush.bf16.msra.mxu2 %v1119_v30  ;;  %239 = vst.msk [vmem:[#allocation4 + $0x8] sm:$0xff] %vm233_vm0, %v1207_v24 }
  0x31   : > { %610 = vmatpush.bf16.msra.mxu3 %v1127_v31  ;;  %554 = vmatmul.bf16.vlgmr.msra.gmra.mxu0 %v933_v40  ;;  %240 = vst.msk [vmem:[#allocation4 + $0x10] sm:$0xff] %vm233_vm0, %v1207_v24 }
  0x32   : > { %573 = vmatmul.bf16.vlgmr.msra.gmra.mxu1 %v937_v41  ;;  %241 = vst.msk [vmem:[#allocation4 + $0x18] sm:$0xff] %vm233_vm0, %v1207_v24  ;;  %v629_v25 = vld [vmem:[#allocation3] sm:$0xff] }
  0x33   : > { %592 = vmatmul.bf16.vlgmr.msra.gmra.mxu2 %v941_v42  ;;  %v630_v31 = vld [vmem:[#allocation3 + $0x8] sm:$0xff] }
  0x34   : > { %611 = vmatmul.bf16.vlgmr.msra.gmra.mxu3 %v945_v43  ;;  %v631_v42 = vld [vmem:[#allocation3 + $0x10] sm:$0xff] }
  0x36   : > { %v650_v27 = vld [vmem:[#allocation4] sm:$0xff] }
  0x37   : > { %v651_v33 = vld [vmem:[#allocation4 + $0x8] sm:$0xff] }
  0x38   : > { %v652_v45 = vld [vmem:[#allocation4 + $0x10] sm:$0xff] }
  0x41   : > { %559 = vmatmul.bf16.gmra.mxu0 %v949_v52 }
  0x42   : > { %578 = vmatmul.bf16.gmra.mxu1 %v953_v53 }
  0x43   : > { %597 = vmatmul.bf16.gmra.mxu2 %v957_v54 }
  0x44   : > { %616 = vmatmul.bf16.gmra.mxu3 %v961_v55 }
  0xae   : > { %v555_v56 = vpop.f32.mrf.mxu0 }
  0xaf   : > { %v574_v57 = vpop.f32.mrf.mxu1 }
  0xb0   : > { %v575_v58 = vadd.f32 %v574_v57, %v555_v56  ;;  %v632_v56 = vld [vmem:[#allocation3 + $0x18] sm:$0xff] }
  0xb6   : > { %v593_v59 = vpop.f32.mrf.mxu2  ;;  %v557_v62 = vpop.f32.mrf.mxu0 }
  0xb7   : > { %v612_v60 = vpop.f32.mrf.mxu3  ;;  %v594_v61 = vadd.f32 %v593_v59, %v575_v58  ;;  %v576_v63 = vpop.f32.mrf.mxu1 }
  0xb8   : > { %v577_v2 = vadd.f32 %v576_v63, %v557_v62 }
  0xb9   : > { %v613_v0 = vadd.f32 %v612_v60, %v594_v61 }
  0xbb   : > { %625 = vst [vmem:[#allocation2 + $0x10] sm:$0xff] %v613_v0  ;;  %633 = vadd.xlane.f32.xlu0 %v613_v0  ;;  %v654_v1 = vmul.f32 %v613_v0, %v613_v0 }
  0xbd   : > { %658 = vadd.xlane.f32.xlu2 %v654_v1 }
  0xbe   : > { %v595_v3 = vpop.f32.mrf.mxu2  ;;  %v560_v6 = vpop.f32.mrf.mxu0 }
  0xbf   : > { %v614_v4 = vpop.f32.mrf.mxu3  ;;  %v596_v5 = vadd.f32 %v595_v3, %v577_v2  ;;  %v579_v7 = vpop.f32.mrf.mxu1 }
  0xc0   : > { %v580_v9 = vadd.f32 %v579_v7, %v560_v6  ;;  %v653_v6 = vld [vmem:[#allocation4 + $0x18] sm:$0xff] }
  0xc1   : > { %v615_v8 = vadd.f32 %v614_v4, %v596_v5 }
  0xc3   : > { %626 = vst [vmem:[#allocation2] sm:$0xff] %v615_v8  ;;  %635 = vadd.xlane.f32.xlu0 %v615_v8  ;;  %v655_v10 = vmul.f32 %v615_v8, %v615_v8 }
  0xc5   : > { %660 = vadd.xlane.f32.xlu2 %v655_v10 }
  0xc6   : > { %v598_v11 = vpop.f32.mrf.mxu2  ;;  %v562_v15 = vpop.f32.mrf.mxu0 }
  0xc7   : > { %v617_v12 = vpop.f32.mrf.mxu3  ;;  %v599_v13 = vadd.f32 %v598_v11, %v580_v9  ;;  %v581_v16 = vpop.f32.mrf.mxu1 }
  0xc8   : > { %v582_v18 = vadd.f32 %v581_v16, %v562_v15  ;;  %v705_v15 = vld [vmem:[%s1480_s2] sm:$0xff] }
  0xc9   : > { %v618_v14 = vadd.f32 %v617_v12, %v599_v13 }
  0xcb   : > { %627 = vst [vmem:[#allocation2 + $0x18] sm:$0xff] %v618_v14  ;;  %637 = vadd.xlane.f32.xlu1 %v618_v14  ;;  %v656_v17 = vmul.f32 %v618_v14, %v618_v14 }
  0xcd   : > { %662 = vadd.xlane.f32.xlu0 %v656_v17 }
  0xce   : > { %v600_v19 = vpop.f32.mrf.mxu2 }
  0xcf   : > { %v601_v20 = vadd.f32 %v600_v19, %v582_v18  ;;  %v619_v21 = vpop.f32.mrf.mxu3 }
  0xd1   : > { %v620_v22 = vadd.f32 %v619_v21, %v601_v20 }
  0xd3   : > { %628 = vst [vmem:[#allocation2 + $0x8] sm:$0xff] %v620_v22  ;;  %639 = vadd.xlane.f32.xlu1 %v620_v22  ;;  %v657_v23 = vmul.f32 %v620_v22, %v620_v22 }
  0xdb   : > { %664 = vadd.xlane.f32.xlu1 %v657_v23  ;;  %v761_v23 = vld [vmem:[%s1481_s3] sm:$0xff] }
 0x12e   : > { %v634_v26 = vpop.xlane.xlu0 %633 }
 0x12f   : > { %v641_v28 = vadd.f32 %v634_v26, %v629_v25 }
 0x130   : > { %v659_v29 = vpop.xlane.xlu2 %658 }
 0x131   : > { %646 = vst.msk [vmem:[#allocation3] sm:$0xff] %vm233_vm0, %v641_v28  ;;  %v666_v30 = vadd.f32 %v659_v29, %v650_v27 }
 0x133   : > { %670 = vst.msk [vmem:[#allocation4] sm:$0xff] %vm233_vm0, %v666_v30 }
 0x136   : > { %v636_v32 = vpop.xlane.xlu0 %635 }
 0x137   : > { %v642_v34 = vadd.f32 %v636_v32, %v630_v31  ;;  %v706_v32 = vld [vmem:[%s1480_s2 + $0x8] sm:$0xff] }
 0x138   : > { %v677_v35 = vld [vmem:[#allocation3] sm:$0xff]  ;;  %v661_v36 = vpop.xlane.xlu2 %660 }
 0x139   : > { %v1409_v37 = vmul.f32 0.03125, %v677_v35  ;;  %647 = vst.msk [vmem:[#allocation3 + $0x8] sm:$0xff] %vm233_vm0, %v642_v34  ;;  %v667_v38 = vadd.f32 %v661_v36, %v651_v33 }
 0x13a   : > { %v685_v39 = vld [vmem:[#allocation4] sm:$0xff] }
 0x13b   : > { %v693_v40 = vmul.f32 %v1409_v37, %v1409_v37  ;;  %v689_v41 = vmul.f32 0.03125, %v685_v39  ;;  %671 = vst.msk [vmem:[#allocation4 + $0x8] sm:$0xff] %vm233_vm0, %v667_v38 }
 0x13d   : > { %v697_v43 = vsub.f32 %v689_v41, %v693_v40  ;;  %v762_v40 = vld [vmem:[%s1481_s3 + $0x8] sm:$0xff] }
 0x13e   : > { %v638_v44 = vpop.xlane.xlu1 %637 }
 0x13f   : > { %v701_v46 = vmax.f32 %v697_v43, 0.0  ;;  %v643_v47 = vadd.f32 %v638_v44, %v631_v42 }
 0x140   : > { %v678_v48 = vld [vmem:[#allocation3 + $0x8] sm:$0xff]  ;;  %v663_v49 = vpop.xlane.xlu0 %662 }
 0x141   : > { %v709_v50 = vadd.f32 1e-05, %v701_v46  ;;  %v1415_v51 = vmul.f32 0.03125, %v678_v48  ;;  %648 = vst.msk [vmem:[#allocation3 + $0x10] sm:$0xff] %vm233_vm0, %v643_v47  ;;  %v668_v52 = vadd.f32 %v663_v49, %v652_v45  ;;  %v707_v46 = vld [vmem:[%s1480_s2 + $0x10] sm:$0xff] }
 0x142   : > { %v686_v53 = vld [vmem:[#allocation4 + $0x8] sm:$0xff] }
 0x143   : > { %1172 = vrsqrt.f32 %v709_v50  ;;  %v694_v54 = vmul.f32 %v1415_v51, %v1415_v51  ;;  %v690_v55 = vmul.f32 0.03125, %v686_v53  ;;  %672 = vst.msk [vmem:[#allocation4 + $0x10] sm:$0xff] %vm233_vm0, %v668_v52  ;;  %vm719_vm2 = vweird.f32 %v709_v50 }
 0x145   : > { %v698_v57 = vsub.f32 %v690_v55, %v694_v54 }
 0x146   : > { %v640_v58 = vpop.xlane.xlu1 %639 }
 0x147   : > { %v702_v59 = vmax.f32 %v698_v57, 0.0  ;;  %v644_v60 = vadd.f32 %v640_v58, %v632_v56  ;;  %v708_v58 = vld [vmem:[%s1480_s2 + $0x18] sm:$0xff] }
 0x148   : > { %v679_v61 = vld [vmem:[#allocation3 + $0x10] sm:$0xff] }
 0x149   : > { %v1173_v62 = vpop.eup %1172  ;;  %v710_v63 = vadd.f32 1e-05, %v702_v59  ;;  %v1421_v0 = vmul.f32 0.03125, %v679_v61  ;;  %649 = vst.msk [vmem:[#allocation3 + $0x18] sm:$0xff] %vm233_vm0, %v644_v60 }
 0x14a   : > { %v714_v1 = vmul.f32 %v1173_v62, %v709_v50  ;;  %v687_v2 = vld [vmem:[#allocation4 + $0x10] sm:$0xff]  ;;  %vm720_vm1 = vweird.f32 %v1173_v62 }
 0x14b   : > { %1174 = vrsqrt.f32 %v710_v63  ;;  %v695_v3 = vmul.f32 %v1421_v0, %v1421_v0  ;;  %v691_v4 = vmul.f32 0.03125, %v687_v2  ;;  %vm721_vm3 = vmor %vm719_vm2, %vm720_vm1  ;;  %vm729_vm5 = vweird.f32 %v710_v63  ;;  %v763_v50 = vld [vmem:[%s1481_s3 + $0x10] sm:$0xff] }
 0x14c   : > { %v715_v5 = vmul.f32 %v1173_v62, %v714_v1 }
 0x14d   : > { %v699_v7 = vsub.f32 %v691_v4, %v695_v3 }
 0x14e   : > { %v716_v8 = vmul.f32 0.5, %v715_v5  ;;  %v665_v9 = vpop.xlane.xlu1 %664 }
 0x14f   : > { %v703_v10 = vmax.f32 %v699_v7, 0.0  ;;  %v669_v11 = vadd.f32 %v665_v9, %v653_v6 }
 0x150   : > { %v717_v12 = vsub.f32 1.5, %v716_v8  ;;  %v680_v18 = vld [vmem:[#allocation3 + $0x18] sm:$0xff] }
 0x151   : > { %v1175_v13 = vpop.eup %1174  ;;  %v711_v14 = vadd.f32 1e-05, %v703_v10  ;;  %673 = vst.msk [vmem:[#allocation4 + $0x18] sm:$0xff] %vm233_vm0, %v669_v11  ;;  %v684_v22 = vmul.f32 0.03125, %v680_v18 }
 0x152   : > { %v718_v16 = vmul.f32 %v1173_v62, %v717_v12  ;;  %v724_v17 = vmul.f32 %v1175_v13, %v710_v63  ;;  %vm730_vm4 = vweird.f32 %v1175_v13 }
 0x153   : > { %1176 = vrsqrt.f32 %v711_v14  ;;  %v696_v30 = vmul.f32 %v684_v22, %v684_v22  ;;  %vm731_vm6 = vmor %vm729_vm5, %vm730_vm4  ;;  %vm739_vm8 = vweird.f32 %v711_v14 }
 0x154   : > { %v722_v19 = vsel %vm721_vm3, %v1173_v62, %v718_v16  ;;  %v725_v20 = vmul.f32 %v1175_v13, %v724_v17  ;;  %v764_v62 = vld [vmem:[%s1481_s3 + $0x18] sm:$0xff] }
 0x155   : > { %v753_v21 = vmul.f32 %v722_v19, %v705_v15 }
 0x156   : > { %v726_v24 = vmul.f32 0.5, %v725_v20 }
 0x157   : > { %757 = vst.msk [vmem:[#allocation5] sm:$0xff] %vm233_vm0, %v753_v21  ;;  %v765_v25 = vmul.f32 %v753_v21, %v1409_v37 }
 0x158   : > { %v727_v26 = vsub.f32 1.5, %v726_v24  ;;  %v688_v27 = vld [vmem:[#allocation4 + $0x18] sm:$0xff] }
 0x159   : > { %v1177_v28 = vpop.eup %1176  ;;  %v769_v29 = vsub.f32 %v761_v23, %v765_v25  ;;  %v692_v31 = vmul.f32 0.03125, %v688_v27 }
 0x15a   : > { %v728_v33 = vmul.f32 %v1175_v13, %v727_v26  ;;  %v734_v34 = vmul.f32 %v1177_v28, %v711_v14  ;;  %vm740_vm7 = vweird.f32 %v1177_v28 }
 0x15b   : > { %773 = vst.msk [vmem:[#allocation6] sm:$0xff] %vm233_vm0, %v769_v29  ;;  %v700_v35 = vsub.f32 %v692_v31, %v696_v30  ;;  %vm741_vm9 = vmor %vm739_vm8, %vm740_vm7 }
 0x15c   : > { %v732_v36 = vsel %vm731_vm6, %v1175_v13, %v728_v33  ;;  %v735_v37 = vmul.f32 %v1177_v28, %v734_v34 }
 0x15d   : > { %v754_v38 = vmul.f32 %v732_v36, %v706_v32  ;;  %v704_v39 = vmax.f32 %v700_v35, 0.0 }
 0x15e   : > { %v736_v41 = vmul.f32 0.5, %v735_v37 }
 0x15f   : > { %758 = vst.msk [vmem:[#allocation5 + $0x8] sm:$0xff] %vm233_vm0, %v754_v38  ;;  %v766_v42 = vmul.f32 %v754_v38, %v1415_v51  ;;  %v712_v43 = vadd.f32 1e-05, %v704_v39 }
 0x160   : > { %v737_v44 = vsub.f32 1.5, %v736_v41 }
 0x161   : > { %v770_v45 = vsub.f32 %v762_v40, %v766_v42  ;;  %1178 = vrsqrt.f32 %v712_v43  ;;  %vm749_vm11 = vweird.f32 %v712_v43 }
 0x162   : > { %v738_v47 = vmul.f32 %v1177_v28, %v737_v44 }
 0x163   : > { %774 = vst.msk [vmem:[#allocation6 + $0x8] sm:$0xff] %vm233_vm0, %v770_v45 }
 0x164   : > { %v742_v48 = vsel %vm741_vm9, %v1177_v28, %v738_v47 }
 0x165   : > { %v755_v49 = vmul.f32 %v742_v48, %v707_v46 }
 0x167   : > { %v1179_v51 = vpop.eup %1178  ;;  %759 = vst.msk [vmem:[#allocation5 + $0x10] sm:$0xff] %vm233_vm0, %v755_v49  ;;  %v767_v52 = vmul.f32 %v755_v49, %v1421_v0 }
 0x168   : > { %v744_v53 = vmul.f32 %v1179_v51, %v712_v43  ;;  %vm750_vm10 = vweird.f32 %v1179_v51 }
 0x169   : > { %v771_v54 = vsub.f32 %v763_v50, %v767_v52  ;;  %vm751_vm12 = vmor %vm749_vm11, %vm750_vm10 }
 0x16a   : > { %v745_v55 = vmul.f32 %v1179_v51, %v744_v53 }
 0x16b   : > { %775 = vst.msk [vmem:[#allocation6 + $0x10] sm:$0xff] %vm233_vm0, %v771_v54 }
 0x16c   : > { %v746_v56 = vmul.f32 0.5, %v745_v55 }
 0x16e   : > { %v747_v57 = vsub.f32 1.5, %v746_v56 }
 0x170   : > { %v748_v59 = vmul.f32 %v1179_v51, %v747_v57 }
 0x172   : > { %v752_v60 = vsel %vm751_vm12, %v1179_v51, %v748_v59 }
 0x173   : > { %v756_v61 = vmul.f32 %v752_v60, %v708_v58 }
 0x175   : > { %760 = vst.msk [vmem:[#allocation5 + $0x18] sm:$0xff] %vm233_vm0, %v756_v61  ;;  %v768_v63 = vmul.f32 %v756_v61, %v684_v22 }
 0x177   : > { %v772_v0 = vsub.f32 %v764_v62, %v768_v63 }
 0x179   : > { %776 = vst.msk [vmem:[#allocation6 + $0x18] sm:$0xff] %vm233_vm0, %v772_v0 }
 0x17a PF: > { %p1090_p5 = scmp.ne.s32.totalorder %s1197_s15, 1 }
 0x17c   : > { %780 = sbr.rel (%p1090_p5) target bundleno = 525 (0x20d), region = 52 }
 0x181   : > { %v790_v1 = vld [vmem:[#allocation5 + $0x10] sm:$0xff]  ;;  %v788_v2 = vld [vmem:[#allocation5] sm:$0xff]  ;;  %v1208_v3 = vmov 0   ;;  %v791_v5 = vld [vmem:[#allocation5 + $0x18] sm:$0xff] }
 0x182   : > { %1181 = vset.pattern.permute.xlu1 %v1208_v3  ;;  %1180 = vset.pattern.permute.xlu0 %v1208_v3  ;;  %v816_v4 = vld [vmem:[#allocation6] sm:$0xff]  ;;  %v789_v6 = vld [vmem:[#allocation5 + $0x8] sm:$0xff]  ;;  %v819_v8 = vld [vmem:[#allocation6 + $0x18] sm:$0xff] }
 0x183   : > { %804 = vperm.xlu1 %1181, %v790_v1   ;;  %794 = vperm.xlu0 %1180, %v788_v2   ;;  %v817_v7 = vld [vmem:[#allocation6 + $0x8] sm:$0xff]  ;;  %v818_v9 = vld [vmem:[#allocation6 + $0x10] sm:$0xff]  ;;  %v785_v15 = vld [vmem:[#allocation2] sm:$0xff] }
 0x184   : > { %1182 = vset.pattern.permute.xlu2 %v1208_v3  ;;  %v784_v13 = vld [vmem:[#allocation2 + $0x10] sm:$0xff]  ;;  %v786_v22 = vld [vmem:[#allocation2 + $0x18] sm:$0xff]  ;;  %v787_v23 = vld [vmem:[#allocation2 + $0x8] sm:$0xff] }
 0x185   : > { %822 = vperm.xlu2 %1182, %v816_v4  }
 0x18b   : > { %809 = vperm.xlu1 %1181, %v791_v5   ;;  %799 = vperm.xlu0 %1180, %v789_v6  }
 0x18d   : > { %827 = vperm.xlu2 %1182, %v817_v7  }
 0x193   : > { %837 = vperm.xlu1 %1181, %v819_v8   ;;  %832 = vperm.xlu0 %1180, %v818_v9  }
 0x1df   : > { %v823_v10 = vpop.permute.xlu2 %822 }
 0x1e7   : > { %v828_v20 = vpop.permute.xlu2 %827 }
 0x1f5   : > { %v805_v11 = vpop.permute.xlu1 %804  ;;  %v795_v12 = vpop.permute.xlu0 %794 }
 0x1f6   : > { %v812_v14 = vmul.f32 %v795_v12, %v784_v13  ;;  %v814_v26 = vmul.f32 %v805_v11, %v786_v22 }
 0x1f8   : > { %v840_v18 = vadd.f32 %v823_v10, %v812_v14 }
 0x1fa   : > { %v844_v24 = vmax.f32 %v840_v18, 0.0 }
 0x1fd   : > { %v810_v16 = vpop.permute.xlu1 %809  ;;  %v800_v17 = vpop.permute.xlu0 %799 }
 0x1fe   : > { %v813_v19 = vmul.f32 %v800_v17, %v785_v15  ;;  %v815_v27 = vmul.f32 %v810_v16, %v787_v23 }
 0x200   : > { %v841_v21 = vadd.f32 %v828_v20, %v813_v19 }
 0x202   : > { %v845_v25 = vmax.f32 %v841_v21, 0.0 }
 0x204   : > { %v1138_v28 = vpack.c.bf16 %v845_v25, %v844_v24 }
 0x205   : > { %v838_v29 = vpop.permute.xlu1 %837  ;;  %v833_v30 = vpop.permute.xlu0 %832 }
 0x206   : > { %1139 = vst [vmem:[%s1482_s4] sm:$0xff] %v1138_v28   ;;  %v843_v31 = vadd.f32 %v838_v29, %v815_v27  ;;  %v842_v32 = vadd.f32 %v833_v30, %v814_v26 }
 0x208   : > { %v847_v33 = vmax.f32 %v843_v31, 0.0  ;;  %v846_v34 = vmax.f32 %v842_v32, 0.0 }
 0x20a   : > { %v1143_v35 = vpack.c.bf16 %v847_v33, %v846_v34 }
 0x20c   : > { %1145 = vst [vmem:[%s1482_s4 + $0x8] sm:$0xff] %v1143_v35  }
 0x20d PF: > { %s14_s17 = sadd.s32 1, %s1205_s17   ;;  %s1483_s15 = smov %s1201_s16 }
 0x20e   : > { %p11_p6 = scmp.ge.s32.totalorder %s14_s17, 4   ;;  %s1484_s16 = smov %s1486_s18 }
 0x210   :  { %13 = sbr.rel (!%p11_p6) target bundleno = 2 (0x2), region = 84 }

</bundles_post_ra>
